<compile_context>
chip_gen: v7x
topology: tpu7x:2x2x1
jax: 0.10.0
libtpu: 0.0.40
codegen_flags: <defaults>
</compile_context>

<pallas_src>
import functools

import jax
import jax.numpy as jnp
from jax.experimental import pallas as pl
from jax.experimental.pallas import tpu as pltpu

_SUBLANE = 8        # f32 sublane granularity (minimum batch-tile granularity)
_ALIGN = 256        # K/N alignment: v6e/v7x MXU is 256x256 (128 suffices only on v5e)
_MAX_TILE_M = 256   # batch rows per grid step (matches MXU height on v6e/v7x)


def _round_up(n, m):
    return ((n + m - 1) // m) * m


def _fused_mlp_kernel(x_ref, *refs, relu_flags):
    """refs = (w0, b0, w1, b1, ..., o_ref).

    The whole MLP runs per batch tile inside one kernel invocation: the activation
    `h` never touches HBM between layers.  Matmul operands are bf16 (MXU-native on
    v5e/v6e/v7x); accumulation and the bias+ReLU epilogue are f32.  All K/N feature
    dims are zero-padded to _ALIGN lanes by the wrapper -- exact for Linear+ReLU
    chains (zero rows/cols contribute nothing, relu(0) == 0) and keeps every matmul
    and the final store lane-dense.
    """
    o_ref = refs[-1]
    num_layers = (len(refs) - 1) // 2
    h = x_ref[...].astype(jnp.float32)
    for i in range(num_layers):
        w = refs[2 * i][...]                 # bf16 (in_p, out_p), VMEM-resident
        b = refs[2 * i + 1][...]             # f32  (1, out_p)
        # bf16 x bf16 -> f32 accumulate on the MXU.
        # TODO(synk): on v7x, fp8 weights (f32 accum) would halve weight bytes again.
        h = jnp.dot(h.astype(jnp.bfloat16), w, preferred_element_type=jnp.float32)
        h = h + b                            # f32 epilogue
        if relu_flags[i]:
            h = jnp.maximum(h, 0.0)
    o_ref[...] = h.astype(o_ref.dtype)


def _weight_spec(shape, single_buffer):
    """Constant index_map -> block is fetched once and stays resident across all
    batch-grid steps.  pl.Buffered(1) (when available) avoids allocating a second,
    useless buffer for these never-refetched operands."""
    nd = len(shape)
    index_map = lambda *_: (0,) * nd
    if single_buffer and hasattr(pl, "Buffered"):
        try:
            return pl.BlockSpec(shape, index_map, pipeline_mode=pl.Buffered(1))
        except TypeError:  # this Pallas build's BlockSpec has no pipeline_mode kwarg
            pass
    return pl.BlockSpec(shape, index_map)


def _vmem_budget_bytes(tile_m, in_p, padded_params, out_itemsize, single_buffer_weights):
    """Resident footprint: weights/biases (+double buffer if needed), double-buffered
    x/o tiles, live f32 activation.  ~40% headroom, floor 16 MiB, cap at v7x's 64 MiB."""
    w_mult = 1 if single_buffer_weights else 2
    weight_bytes = w_mult * sum(
        w.size * w.dtype.itemsize + b.size * b.dtype.itemsize for w, b in padded_params)
    widths = [in_p] + [w.shape[1] for w, _ in padded_params]
    x_bytes = 2 * tile_m * in_p * 4
    o_bytes = 2 * tile_m * widths[-1] * out_itemsize
    act_bytes = 2 * tile_m * max(widths) * 4
    total = int(1.4 * (weight_bytes + x_bytes + o_bytes + act_bytes)) + (2 << 20)
    return min(max(total, 16 << 20), 64 << 20)


def fused_mlp_pallas(x, padded_params, relu_flags, tile_m, *, single_buffer_weights=True):
    """x: (B_p, in_p) with B_p % tile_m == 0 and in_p == padded first-layer K.
    Returns (B_p, out_p) where out_p is the padded last-layer width."""
    batch_p, in_p = x.shape
    out_p = padded_params[-1][0].shape[1]
    grid = (batch_p // tile_m,)

    flat = []
    for w, b in padded_params:
        flat.extend((w, b))

    # Advisory cost estimate for XLA scheduling around the custom call.
    flops = 0
    bytes_accessed = batch_p * in_p * x.dtype.itemsize
    for w, b in padded_params:
        flops += 2 * batch_p * w.shape[0] * w.shape[1]
        bytes_accessed += w.size * w.dtype.itemsize + b.size * b.dtype.itemsize
    bytes_accessed += batch_p * out_p * x.dtype.itemsize

    kernel = functools.partial(_fused_mlp_kernel, relu_flags=tuple(relu_flags))

    in_specs = [pl.BlockSpec((tile_m, in_p), lambda i: (i, 0))]
    in_specs += [_weight_spec(a.shape, single_buffer_weights) for a in flat]

    return pl.pallas_call(
        kernel,
        out_shape=jax.ShapeDtypeStruct((batch_p, out_p), x.dtype),
        grid=grid,
        in_specs=in_specs,
        out_specs=pl.BlockSpec((tile_m, out_p), lambda i: (i, 0)),
        compiler_params=pltpu.CompilerParams(
            dimension_semantics=("parallel",),  # megacore: shard batch tiles on v7x
            vmem_limit_bytes=_vmem_budget_bytes(
                tile_m, in_p, padded_params, x.dtype.itemsize, single_buffer_weights)),
        cost_estimate=pl.CostEstimate(
            flops=flops, transcendentals=0, bytes_accessed=bytes_accessed),
    )(x, *flat)


def init_mlp_params(key, input_dim, hidden_dims, output_dim=None, dtype=jnp.float32):
    """Deterministic init mirroring nn.Linear's U(-1/sqrt(fan_in), 1/sqrt(fan_in))."""
    dims = [input_dim] + list(hidden_dims)
    layer_dims = list(zip(dims[:-1], dims[1:]))
    if output_dim is not None:
        layer_dims.append((dims[-1], output_dim))
    params = []
    for in_d, out_d in layer_dims:
        key, kw, kb = jax.random.split(key, 3)
        bound = 1.0 / (in_d ** 0.5)
        w = jax.random.uniform(kw, (in_d, out_d), dtype, -bound, bound)
        b = jax.random.uniform(kb, (1, out_d), dtype, -bound, bound)
        params.append((w, b))
    return params


def pad_params_for_tpu(params, align=_ALIGN):
    """Zero-pad every matmul dim (first-layer K and each layer's N) to `align` and
    store weights as bf16 (halves HBM weight streaming; MXU-native).  Done once,
    outside the kernel.  NOTE: zero padding is exact ONLY for Linear(+ReLU) chains;
    an activation with f(0) != 0 would pollute the padded lanes."""
    padded = []
    prev_out_p = None
    for i, (w, b) in enumerate(params):
        in_d, out_d = w.shape
        in_p = _round_up(in_d, align) if i == 0 else prev_out_p
        out_p = _round_up(out_d, align)
        w_p = jnp.pad(w, ((0, in_p - in_d), (0, out_p - out_d))).astype(jnp.bfloat16)
        b_p = jnp.pad(b, ((0, 0), (0, out_p - out_d))).astype(jnp.float32)
        padded.append((w_p, b_p))
        prev_out_p = out_p
    return padded


def mlp_forward(x, padded_params, logical_output_dim, has_output_layer,
                max_tile_m=_MAX_TILE_M):
    """(Linear -> ReLU) for hidden layers; the optional final Linear has no ReLU --
    matches the PyTorch MLP semantics.  One fused Pallas kernel, batch-tiled grid."""
    batch, in_dim = x.shape
    in_p = padded_params[0][0].shape[0]

    batch_p = _round_up(batch, _SUBLANE)
    tile_m = min(max_tile_m, batch_p)
    batch_p = _round_up(batch_p, tile_m)
    if batch_p != batch or in_p != in_dim:
        x = jnp.pad(x, ((0, batch_p - batch), (0, in_p - in_dim)))

    relu_flags = [True] * len(padded_params)
    if has_output_layer:
        relu_flags[-1] = False

    # TODO(synk): layers whose single weight exceeds the per-layer VMEM budget should
    # stream K/N weight tiles with pltpu.emit_pipeline instead of full-layer blocks.
    try:
        out_padded = fused_mlp_pallas(x, padded_params, relu_flags, tile_m)
    except Exception:
        # Fallback: this Pallas build rejected single-buffered (Buffered(1)) resident
        # weight blocks -> retry with default double-buffered weight specs.
        out_padded = fused_mlp_pallas(x, padded_params, relu_flags, tile_m,
                                      single_buffer_weights=False)
    return out_padded[:batch, :logical_output_dim]


def mlp_reference(x, params, has_output_layer):
    n = len(params)
    h = x
    for i, (w, b) in enumerate(params):
        h = h @ w + b
        if not (has_output_layer and i == n - 1):
            h = jnp.maximum(h, 0.0)
    return h


if __name__ == "__main__":
    key = jax.random.PRNGKey(0)
    k_params, k_x = jax.random.split(key)

    # Small shapes consistent with the module: MLP(32, [64, 64], output_dim=16)
    batch = 8
    input_dim = 32
    hidden_dims = [64, 64]
    output_dim = 16

    params = init_mlp_params(k_params, input_dim, hidden_dims, output_dim)
    padded_params = pad_params_for_tpu(params)
    x = jax.random.normal(k_x, (batch, input_dim), jnp.float32)

    out = mlp_forward(x, padded_params,
                      logical_output_dim=output_dim, has_output_layer=True)
    out = jax.block_until_ready(out)

    ref = mlp_reference(x, params, has_output_layer=True)
    assert out.shape == (batch, output_dim)
    # bf16 matmul operands with f32 accumulation: compare to the f32 reference with a
    # correspondingly looser tolerance.
    assert jnp.allclose(out, ref, atol=5e-2, rtol=5e-2), "mismatch vs reference"

    print("KERNEL_OK")
</pallas_src>

<mosaic_0001>
module attributes {stable_mosaic.version = 11 : i64} {
  func.func @_fused_mlp_kernel(%arg0: i32, %arg1: memref<8x256xf32, #tpu.memory_space<vmem>>, %arg2: memref<256x256xbf16, #tpu.memory_space<vmem>>, %arg3: memref<1x256xf32, #tpu.memory_space<vmem>>, %arg4: memref<256x256xbf16, #tpu.memory_space<vmem>>, %arg5: memref<1x256xf32, #tpu.memory_space<vmem>>, %arg6: memref<256x256xbf16, #tpu.memory_space<vmem>>, %arg7: memref<1x256xf32, #tpu.memory_space<vmem>>, %arg8: memref<8x256xf32, #tpu.memory_space<vmem>>) attributes {dimension_semantics = [#tpu.dimension_semantics<parallel>], iteration_bounds = array<i64: 1>, scalar_prefetch = 0 : i64, scratch_operands = 0 : i64, tpu.core_type = #tpu.core_type<tc>, window_params = [{transform_indices = @transform_0, window_bounds = array<i64: 8, 256>}, {pipeline_mode = #tpu.pipeline_mode<synchronous>, transform_indices = @transform_1, window_bounds = array<i64: 256, 256>}, {pipeline_mode = #tpu.pipeline_mode<synchronous>, transform_indices = @transform_2, window_bounds = array<i64: 1, 256>}, {pipeline_mode = #tpu.pipeline_mode<synchronous>, transform_indices = @transform_3, window_bounds = array<i64: 256, 256>}, {pipeline_mode = #tpu.pipeline_mode<synchronous>, transform_indices = @transform_4, window_bounds = array<i64: 1, 256>}, {pipeline_mode = #tpu.pipeline_mode<synchronous>, transform_indices = @transform_5, window_bounds = array<i64: 256, 256>}, {pipeline_mode = #tpu.pipeline_mode<synchronous>, transform_indices = @transform_6, window_bounds = array<i64: 1, 256>}, {transform_indices = @transform_7, window_bounds = array<i64: 8, 256>}]} {
    %c0 = arith.constant 0 : index
    %c0_0 = arith.constant 0 : index
    %0 = vector.load %arg1[%c0, %c0_0] : memref<8x256xf32, #tpu.memory_space<vmem>>, vector<8x256xf32>
    %c0_1 = arith.constant 0 : index
    %c0_2 = arith.constant 0 : index
    %1 = vector.load %arg2[%c0_1, %c0_2] : memref<256x256xbf16, #tpu.memory_space<vmem>>, vector<256x256xbf16>
    %c0_3 = arith.constant 0 : index
    %c0_4 = arith.constant 0 : index
    %2 = vector.load %arg3[%c0_3, %c0_4] : memref<1x256xf32, #tpu.memory_space<vmem>>, vector<1x256xf32>
    %3 = arith.truncf %0 : vector<8x256xf32> to vector<8x256xbf16>
    %cst = arith.constant dense<0.000000e+00> : vector<8x256xf32>
    %4 = tpu.matmul %3, %1, %cst {dimension_numbers = #tpu.dot_dimension_numbers<[1], [0], [0], [1], [0, 0, 1, 1], [], []>} : vector<8x256xbf16>, vector<256x256xbf16>, vector<8x256xf32> -> vector<8x256xf32>
    %5 = vector.broadcast %2 : vector<1x256xf32> to vector<8x256xf32>
    %6 = arith.addf %4, %5 : vector<8x256xf32>
    %cst_5 = arith.constant 0.000000e+00 : f32
    %7 = vector.broadcast %cst_5 : f32 to vector<8x256xf32>
    %8 = arith.maximumf %6, %7 : vector<8x256xf32>
    %c0_6 = arith.constant 0 : index
    %c0_7 = arith.constant 0 : index
    %9 = vector.load %arg4[%c0_6, %c0_7] : memref<256x256xbf16, #tpu.memory_space<vmem>>, vector<256x256xbf16>
    %c0_8 = arith.constant 0 : index
    %c0_9 = arith.constant 0 : index
    %10 = vector.load %arg5[%c0_8, %c0_9] : memref<1x256xf32, #tpu.memory_space<vmem>>, vector<1x256xf32>
    %11 = arith.truncf %8 : vector<8x256xf32> to vector<8x256xbf16>
    %cst_10 = arith.constant dense<0.000000e+00> : vector<8x256xf32>
    %12 = tpu.matmul %11, %9, %cst_10 {dimension_numbers = #tpu.dot_dimension_numbers<[1], [0], [0], [1], [0, 0, 1, 1], [], []>} : vector<8x256xbf16>, vector<256x256xbf16>, vector<8x256xf32> -> vector<8x256xf32>
    %13 = vector.broadcast %10 : vector<1x256xf32> to vector<8x256xf32>
    %14 = arith.addf %12, %13 : vector<8x256xf32>
    %cst_11 = arith.constant 0.000000e+00 : f32
    %15 = vector.broadcast %cst_11 : f32 to vector<8x256xf32>
    %16 = arith.maximumf %14, %15 : vector<8x256xf32>
    %c0_12 = arith.constant 0 : index
    %c0_13 = arith.constant 0 : index
    %17 = vector.load %arg6[%c0_12, %c0_13] : memref<256x256xbf16, #tpu.memory_space<vmem>>, vector<256x256xbf16>
    %c0_14 = arith.constant 0 : index
    %c0_15 = arith.constant 0 : index
    %18 = vector.load %arg7[%c0_14, %c0_15] : memref<1x256xf32, #tpu.memory_space<vmem>>, vector<1x256xf32>
    %19 = arith.truncf %16 : vector<8x256xf32> to vector<8x256xbf16>
    %cst_16 = arith.constant dense<0.000000e+00> : vector<8x256xf32>
    %20 = tpu.matmul %19, %17, %cst_16 {dimension_numbers = #tpu.dot_dimension_numbers<[1], [0], [0], [1], [0, 0, 1, 1], [], []>} : vector<8x256xbf16>, vector<256x256xbf16>, vector<8x256xf32> -> vector<8x256xf32>
    %21 = vector.broadcast %18 : vector<1x256xf32> to vector<8x256xf32>
    %22 = arith.addf %20, %21 : vector<8x256xf32>
    %c0_17 = arith.constant 0 : index
    %c0_18 = arith.constant 0 : index
    %23 = vector.load %arg8[%c0_17, %c0_18] : memref<8x256xf32, #tpu.memory_space<vmem>>, vector<8x256xf32>
    tpu.vector_store %arg8[%c0_17, %c0_18], %22 {strides = array<i32>} : memref<8x256xf32, #tpu.memory_space<vmem>>, vector<8x256xf32>,
    return
  }
  func.func @transform_0(%arg0: i32) -> (i32, i32) {
    %c0_i32 = arith.constant 0 : i32
    %c0_i32_0 = arith.constant 0 : i32
    return %arg0, %c0_i32 : i32, i32
  }
  func.func @transform_1(%arg0: i32) -> (i32, i32) {
    %c0_i32 = arith.constant 0 : i32
    %c0_i32_0 = arith.constant 0 : i32
    %c0_i32_1 = arith.constant 0 : i32
    return %c0_i32, %c0_i32_0 : i32, i32
  }
  func.func @transform_2(%arg0: i32) -> (i32, i32) {
    %c0_i32 = arith.constant 0 : i32
    %c0_i32_0 = arith.constant 0 : i32
    %c0_i32_1 = arith.constant 0 : i32
    return %c0_i32, %c0_i32_0 : i32, i32
  }
  func.func @transform_3(%arg0: i32) -> (i32, i32) {
    %c0_i32 = arith.constant 0 : i32
    %c0_i32_0 = arith.constant 0 : i32
    %c0_i32_1 = arith.constant 0 : i32
    return %c0_i32, %c0_i32_0 : i32, i32
  }
  func.func @transform_4(%arg0: i32) -> (i32, i32) {
    %c0_i32 = arith.constant 0 : i32
    %c0_i32_0 = arith.constant 0 : i32
    %c0_i32_1 = arith.constant 0 : i32
    return %c0_i32, %c0_i32_0 : i32, i32
  }
  func.func @transform_5(%arg0: i32) -> (i32, i32) {
    %c0_i32 = arith.constant 0 : i32
    %c0_i32_0 = arith.constant 0 : i32
    %c0_i32_1 = arith.constant 0 : i32
    return %c0_i32, %c0_i32_0 : i32, i32
  }
  func.func @transform_6(%arg0: i32) -> (i32, i32) {
    %c0_i32 = arith.constant 0 : i32
    %c0_i32_0 = arith.constant 0 : i32
    %c0_i32_1 = arith.constant 0 : i32
    return %c0_i32, %c0_i32_0 : i32, i32
  }
  func.func @transform_7(%arg0: i32) -> (i32, i32) {
    %c0_i32 = arith.constant 0 : i32
    %c0_i32_0 = arith.constant 0 : i32
    return %arg0, %c0_i32 : i32, i32
  }
}

module attributes {stable_mosaic.version = 11 : i64} {
  func.func @_fused_mlp_kernel(%arg0: i32, %arg1: memref<8x256xf32, #tpu.memory_space<vmem>>, %arg2: memref<256x256xbf16, #tpu.memory_space<vmem>>, %arg3: memref<1x256xf32, #tpu.memory_space<vmem>>, %arg4: memref<256x256xbf16, #tpu.memory_space<vmem>>, %arg5: memref<1x256xf32, #tpu.memory_space<vmem>>, %arg6: memref<256x256xbf16, #tpu.memory_space<vmem>>, %arg7: memref<1x256xf32, #tpu.memory_space<vmem>>, %arg8: memref<8x256xf32, #tpu.memory_space<vmem>>) attributes {dimension_semantics = [#tpu.dimension_semantics<parallel>], iteration_bounds = array<i64: 1>, scalar_prefetch = 0 : i64, scratch_operands = 0 : i64, tpu.core_type = #tpu.core_type<tc>, window_params = [{transform_indices = @transform_0, window_bounds = array<i64: 8, 256>}, {pipeline_mode = #tpu.pipeline_mode<synchronous>, transform_indices = @transform_1, window_bounds = array<i64: 256, 256>}, {pipeline_mode = #tpu.pipeline_mode<synchronous>, transform_indices = @transform_2, window_bounds = array<i64: 1, 256>}, {pipeline_mode = #tpu.pipeline_mode<synchronous>, transform_indices = @transform_3, window_bounds = array<i64: 256, 256>}, {pipeline_mode = #tpu.pipeline_mode<synchronous>, transform_indices = @transform_4, window_bounds = array<i64: 1, 256>}, {pipeline_mode = #tpu.pipeline_mode<synchronous>, transform_indices = @transform_5, window_bounds = array<i64: 256, 256>}, {pipeline_mode = #tpu.pipeline_mode<synchronous>, transform_indices = @transform_6, window_bounds = array<i64: 1, 256>}, {transform_indices = @transform_7, window_bounds = array<i64: 8, 256>}]} {
    %c0 = arith.constant 0 : index
    %c0_0 = arith.constant 0 : index
    %0 = vector.load %arg1[%c0, %c0_0] : memref<8x256xf32, #tpu.memory_space<vmem>>, vector<8x256xf32>
    %c0_1 = arith.constant 0 : index
    %c0_2 = arith.constant 0 : index
    %1 = vector.load %arg2[%c0_1, %c0_2] : memref<256x256xbf16, #tpu.memory_space<vmem>>, vector<256x256xbf16>
    %c0_3 = arith.constant 0 : index
    %c0_4 = arith.constant 0 : index
    %2 = vector.load %arg3[%c0_3, %c0_4] : memref<1x256xf32, #tpu.memory_space<vmem>>, vector<1x256xf32>
    %3 = arith.truncf %0 : vector<8x256xf32> to vector<8x256xbf16>
    %cst = arith.constant dense<0.000000e+00> : vector<8x256xf32>
    %4 = tpu.matmul %3, %1, %cst {dimension_numbers = #tpu.dot_dimension_numbers<[1], [0], [0], [1], [0, 0, 1, 1], [], []>} : vector<8x256xbf16>, vector<256x256xbf16>, vector<8x256xf32> -> vector<8x256xf32>
    %5 = vector.broadcast %2 : vector<1x256xf32> to vector<8x256xf32>
    %6 = arith.addf %4, %5 : vector<8x256xf32>
    %cst_5 = arith.constant 0.000000e+00 : f32
    %7 = vector.broadcast %cst_5 : f32 to vector<8x256xf32>
    %8 = arith.maximumf %6, %7 : vector<8x256xf32>
    %c0_6 = arith.constant 0 : index
    %c0_7 = arith.constant 0 : index
    %9 = vector.load %arg4[%c0_6, %c0_7] : memref<256x256xbf16, #tpu.memory_space<vmem>>, vector<256x256xbf16>
    %c0_8 = arith.constant 0 : index
    %c0_9 = arith.constant 0 : index
    %10 = vector.load %arg5[%c0_8, %c0_9] : memref<1x256xf32, #tpu.memory_space<vmem>>, vector<1x256xf32>
    %11 = arith.truncf %8 : vector<8x256xf32> to vector<8x256xbf16>
    %cst_10 = arith.constant dense<0.000000e+00> : vector<8x256xf32>
    %12 = tpu.matmul %11, %9, %cst_10 {dimension_numbers = #tpu.dot_dimension_numbers<[1], [0], [0], [1], [0, 0, 1, 1], [], []>} : vector<8x256xbf16>, vector<256x256xbf16>, vector<8x256xf32> -> vector<8x256xf32>
    %13 = vector.broadcast %10 : vector<1x256xf32> to vector<8x256xf32>
    %14 = arith.addf %12, %13 : vector<8x256xf32>
    %cst_11 = arith.constant 0.000000e+00 : f32
    %15 = vector.broadcast %cst_11 : f32 to vector<8x256xf32>
    %16 = arith.maximumf %14, %15 : vector<8x256xf32>
    %c0_12 = arith.constant 0 : index
    %c0_13 = arith.constant 0 : index
    %17 = vector.load %arg6[%c0_12, %c0_13] : memref<256x256xbf16, #tpu.memory_space<vmem>>, vector<256x256xbf16>
    %c0_14 = arith.constant 0 : index
    %c0_15 = arith.constant 0 : index
    %18 = vector.load %arg7[%c0_14, %c0_15] : memref<1x256xf32, #tpu.memory_space<vmem>>, vector<1x256xf32>
    %19 = arith.truncf %16 : vector<8x256xf32> to vector<8x256xbf16>
    %cst_16 = arith.constant dense<0.000000e+00> : vector<8x256xf32>
    %20 = tpu.matmul %19, %17, %cst_16 {dimension_numbers = #tpu.dot_dimension_numbers<[1], [0], [0], [1], [0, 0, 1, 1], [], []>} : vector<8x256xbf16>, vector<256x256xbf16>, vector<8x256xf32> -> vector<8x256xf32>
    %21 = vector.broadcast %18 : vector<1x256xf32> to vector<8x256xf32>
    %22 = arith.addf %20, %21 : vector<8x256xf32>
    %c0_17 = arith.constant 0 : index
    %c0_18 = arith.constant 0 : index
    %23 = vector.load %arg8[%c0_17, %c0_18] : memref<8x256xf32, #tpu.memory_space<vmem>>, vector<8x256xf32>
    tpu.vector_store %arg8[%c0_17, %c0_18], %22 {strides = array<i32>} : memref<8x256xf32, #tpu.memory_space<vmem>>, vector<8x256xf32>,
    return
  }
  func.func @transform_0(%arg0: i32) -> (i32, i32) {
    %c0_i32 = arith.constant 0 : i32
    %c0_i32_0 = arith.constant 0 : i32
    return %arg0, %c0_i32 : i32, i32
  }
  func.func @transform_1(%arg0: i32) -> (i32, i32) {
    %c0_i32 = arith.constant 0 : i32
    %c0_i32_0 = arith.constant 0 : i32
    %c0_i32_1 = arith.constant 0 : i32
    return %c0_i32, %c0_i32_0 : i32, i32
  }
  func.func @transform_2(%arg0: i32) -> (i32, i32) {
    %c0_i32 = arith.constant 0 : i32
    %c0_i32_0 = arith.constant 0 : i32
    %c0_i32_1 = arith.constant 0 : i32
    return %c0_i32, %c0_i32_0 : i32, i32
  }
  func.func @transform_3(%arg0: i32) -> (i32, i32) {
    %c0_i32 = arith.constant 0 : i32
    %c0_i32_0 = arith.constant 0 : i32
    %c0_i32_1 = arith.constant 0 : i32
    return %c0_i32, %c0_i32_0 : i32, i32
  }
  func.func @transform_4(%arg0: i32) -> (i32, i32) {
    %c0_i32 = arith.constant 0 : i32
    %c0_i32_0 = arith.constant 0 : i32
    %c0_i32_1 = arith.constant 0 : i32
    return %c0_i32, %c0_i32_0 : i32, i32
  }
  func.func @transform_5(%arg0: i32) -> (i32, i32) {
    %c0_i32 = arith.constant 0 : i32
    %c0_i32_0 = arith.constant 0 : i32
    %c0_i32_1 = arith.constant 0 : i32
    return %c0_i32, %c0_i32_0 : i32, i32
  }
  func.func @transform_6(%arg0: i32) -> (i32, i32) {
    %c0_i32 = arith.constant 0 : i32
    %c0_i32_0 = arith.constant 0 : i32
    %c0_i32_1 = arith.constant 0 : i32
    return %c0_i32, %c0_i32_0 : i32, i32
  }
  func.func @transform_7(%arg0: i32) -> (i32, i32) {
    %c0_i32 = arith.constant 0 : i32
    %c0_i32_0 = arith.constant 0 : i32
    return %arg0, %c0_i32 : i32, i32
  }
}

</mosaic_0001>

<bundles_post_ra>
// kernel: tpu_custom_call.1
= control target key start
LH: loop header
LB: loop body
LE: loop exit
PB: predicated region body
PF: predicated region fallthrough
CT: control target
= control target key end

     0   :  { %12 = vsyncpa [#allocation3], 0  ;;  %s1336_s0 = inlined_call_operand.hbm [shape: f32[8,256], index: 0, kind: input, shape index: {}]   ;;  %s1337_s1 = inlined_call_operand.hbm [shape: bf16[256,256], index: 1, kind: input, shape index: {}]   ;;  %s1338_s2 = inlined_call_operand.vmem [shape: f32[1,256], index: 2, kind: input, shape index: {}]   ;;  %s1339_s3 = inlined_call_operand.hbm [shape: bf16[256,256], index: 3, kind: input, shape index: {}]   ;;  %s1340_s4 = inlined_call_operand.vmem [shape: f32[1,256], index: 4, kind: input, shape index: {}]   ;;  %s1341_s5 = inlined_call_operand.hbm [shape: bf16[256,256], index: 5, kind: input, shape index: {}]   ;;  %s1342_s6 = inlined_call_operand.vmem [shape: f32[1,256], index: 6, kind: input, shape index: {}]   ;;  %s1343_s7 = inlined_call_operand.hbm [shape: f32[8,256], index: 7, kind: output, shape index: {}]  }
   0x1   :  { %13 = vsyncpa [#allocation6], 0 }
   0x2   :  { %14 = vsyncpa [#allocation9], 0 }
   0x3   :  { %15 = vsyncpa [#allocation4], 0  ;;  %s1211_s24 = smov [#allocation5]   ;;  %s1093_s28 = scalar_lea.hbm %s1337_s1, 4096 }
   0x4   :  { %s31_s25 = sshll.u32 %s1211_s24, 4  ;;  %p1094_p0 = scmp.ne.s32.totalorder %s1337_s1, %s1093_s28  ;;  %s32_s25 = int_to_ptr.vmem [resolvable:$true] %s31_s25 }
   0x5   :  { %p1097_p1 = scmp.lt.u32.totalorder %s1093_s28, %s1337_s1 }
   0x7   :  { %p1099_p2 = pnand %p1097_p1, %p1094_p0 }
   0x9   :  { %1102 = shalt.err (!%p1099_p2)
}
   0xa   :  { %s1103_s10 = scalar_lea.vmem %s32_s25, 4096  ;;  %p1108_p4 = scmp.lt.s32.totalorder %s32_s25, %s32_s25 }
   0xb   :  { %p1104_p3 = scmp.ne.s32.totalorder %s32_s25, %s1103_s10  ;;  %p1109_p5 = scmp.lt.s32.totalorder %s1103_s10, %s1103_s10 }
   0xd   :  { %p1110_p6 = por %p1109_p5, %p1108_p4 }
   0xf   :  { %p1111_p7 = pnand %p1110_p6, %p1104_p3 }
  0x11   :  { %1114 = shalt.err (!%p1111_p7)
}
  0x12   :  { %s1212_s11 = smov 128   ;;  %s1213_s12 = smov 8  }
  0x13   :  { %37 = dma.hbm_to_vmem [thread:$0]  %s1337_s1, 4096, %s32_s25, [#allocation6], %s1212_s11, %s1212_s11, %s1213_s12  }
  0x14   :  { %s1214_s15 = smov [#allocation2]   ;;  %s1215_s17 = smov [#allocation7]  }
  0x15   :  { %s22_s16 = sshll.u32 %s1214_s15, 4  ;;  %s45_s18 = sshll.u32 %s1215_s17, 4  ;;  %s23_s16 = int_to_ptr.vmem [resolvable:$true] %s22_s16  ;;  %s46_s18 = int_to_ptr.vmem [resolvable:$true] %s45_s18 }
  0x16   :  { %s1115_s21 = scalar_lea.hbm %s1336_s0, 256 }
  0x17   :  { %p1116_p8 = scmp.ne.s32.totalorder %s1336_s0, %s1115_s21  ;;  %p1119_p9 = scmp.lt.u32.totalorder %s1115_s21, %s1336_s0 }
  0x19   :  { %p1121_p10 = pnand %p1119_p9, %p1116_p8 }
  0x1b   :  { %1124 = shalt.err (!%p1121_p10)
}
  0x1c   :  { %s1125_s1 = scalar_lea.vmem %s23_s16, 256  ;;  %p1130_p12 = scmp.lt.s32.totalorder %s23_s16, %s23_s16 }
  0x1d   :  { %p1126_p11 = scmp.ne.s32.totalorder %s23_s16, %s1125_s1  ;;  %p1131_p13 = scmp.lt.s32.totalorder %s1125_s1, %s1125_s1 }
  0x1f   :  { %p1132_p0 = por %p1131_p13, %p1130_p12 }
  0x21   :  { %p1133_p1 = pnand %p1132_p0, %p1126_p11 }
  0x23   :  { %1136 = shalt.err (!%p1133_p1)
}
  0x24   :  { %25 = dma.hbm_to_vmem [thread:$0]  %s1336_s0, 256, %s23_s16, [#allocation3]  }
  0x25   :  { %s1137_s30 = scalar_lea.hbm %s1339_s3, 4096 }
  0x26   :  { %p1138_p2 = scmp.ne.s32.totalorder %s1339_s3, %s1137_s30  ;;  %p1141_p3 = scmp.lt.u32.totalorder %s1137_s30, %s1339_s3 }
  0x28   :  { %p1143_p4 = pnand %p1141_p3, %p1138_p2 }
  0x2a   :  { %1146 = shalt.err (!%p1143_p4)
}
  0x2b   :  { %s1147_s14 = scalar_lea.vmem %s46_s18, 4096  ;;  %p1152_p6 = scmp.lt.s32.totalorder %s46_s18, %s46_s18 }
  0x2c   :  { %p1148_p5 = scmp.ne.s32.totalorder %s46_s18, %s1147_s14  ;;  %p1153_p7 = scmp.lt.s32.totalorder %s1147_s14, %s1147_s14 }
  0x2e   :  { %p1154_p8 = por %p1153_p7, %p1152_p6 }
  0x30   :  { %p1155_p9 = pnand %p1154_p8, %p1148_p5 }
  0x32   :  { %1158 = shalt.err (!%p1155_p9)
}
  0x33   :  { %51 = dma.hbm_to_vmem [thread:$0]  %s1339_s3, 4096, %s46_s18, [#allocation6], %s1212_s11, %s1212_s11, %s1213_s12  }
  0x34   :  { %s1216_s16 = smov [#allocation8]   ;;  %s1159_s21 = scalar_lea.hbm %s1341_s5, 4096 }
  0x35   :  { %s59_s17 = sshll.u32 %s1216_s16, 4  ;;  %p1160_p10 = scmp.ne.s32.totalorder %s1341_s5, %s1159_s21  ;;  %s60_s17 = int_to_ptr.vmem [resolvable:$true] %s59_s17 }
  0x36   :  { %p1163_p11 = scmp.lt.u32.totalorder %s1159_s21, %s1341_s5 }
  0x38   :  { %p1165_p12 = pnand %p1163_p11, %p1160_p10 }
  0x3a   :  { %1168 = shalt.err (!%p1165_p12)
}
  0x3b   :  { %s1169_s1 = scalar_lea.vmem %s60_s17, 4096  ;;  %p1174_p0 = scmp.lt.s32.totalorder %s60_s17, %s60_s17 }
  0x3c   :  { %p1170_p13 = scmp.ne.s32.totalorder %s60_s17, %s1169_s1  ;;  %p1175_p1 = scmp.lt.s32.totalorder %s1169_s1, %s1169_s1 }
  0x3e   :  { %p1176_p2 = por %p1175_p1, %p1174_p0 }
  0x40   :  { %p1177_p3 = pnand %p1176_p2, %p1170_p13 }
  0x42   :  { %1180 = shalt.err (!%p1177_p3)
}
  0x43   :  { %65 = dma.hbm_to_vmem [thread:$0]  %s1341_s5, 4096, %s60_s17, [#allocation9], %s1212_s11, %s1212_s11, %s1213_s12  }
  0x44   :  { %1203 = dma.done.wait [#allocation3], 256  }
  0x45   :  { %1204 = vsyncadd [#allocation3], 4294967040 }
  0x46   :  { %1205 = dma.done.wait [#allocation6], 8192  }
  0x47   :  { %1206 = vsyncadd [#allocation6], 4294959104 }
  0x48   :  { %1207 = dma.done.wait [#allocation9], 4096  }
  0x49   :  { %1208 = vsyncadd [#allocation9], 4294963200  ;;  %v949_v0 = vld [vmem:[#allocation5 + $0x4] ss:$8 sps:$4 sm:$0xff]   ;;  %v951_v1 = vld [vmem:[#allocation5] ss:$8 sps:$4 sm:$0xff]  }
  0x4a   :  { %288 = vmatprep.subr.bf16.mxu0 %v949_v0  ;;  %v952_v2 = vld [vmem:[#allocation5 + $0x14] ss:$8 sps:$4 sm:$0xff]   ;;  %v954_v3 = vld [vmem:[#allocation5 + $0x10] ss:$8 sps:$4 sm:$0xff]   ;;  %v955_v4 = vld [vmem:[#allocation5 + $0x24] ss:$8 sps:$4 sm:$0xff]  }
  0x4b   :  { %289 = vmatpush1.bf16.msra.mxu0 %v951_v1  ;;  %v957_v5 = vld [vmem:[#allocation5 + $0x20] ss:$8 sps:$4 sm:$0xff]   ;;  %v958_v6 = vld [vmem:[#allocation5 + $0x34] ss:$8 sps:$4 sm:$0xff]   ;;  %v960_v7 = vld [vmem:[#allocation5 + $0x30] ss:$8 sps:$4 sm:$0xff]  }
  0x4c   :  { %290 = vmatprep.subr.bf16.mxu0 %v952_v2  ;;  %v961_v8 = vld [vmem:[#allocation5 + $0x44] ss:$8 sps:$4 sm:$0xff]   ;;  %v963_v9 = vld [vmem:[#allocation5 + $0x40] ss:$8 sps:$4 sm:$0xff]   ;;  %v964_v10 = vld [vmem:[#allocation5 + $0x54] ss:$8 sps:$4 sm:$0xff]  }
  0x4d   :  { %v966_v11 = vld [vmem:[#allocation5 + $0x50] ss:$8 sps:$4 sm:$0xff]   ;;  %v967_v12 = vld [vmem:[#allocation5 + $0x64] ss:$8 sps:$4 sm:$0xff]   ;;  %v969_v13 = vld [vmem:[#allocation5 + $0x60] ss:$8 sps:$4 sm:$0xff]  }
  0x4e   :  { %v81_v14 = vld [vmem:[#allocation2 + $0x8] sm:$0xff]  ;;  %v997_v16 = vld [vmem:[#allocation7 + $0x4] ss:$8 sps:$4 sm:$0xff]   ;;  %v999_v17 = vld [vmem:[#allocation7] ss:$8 sps:$4 sm:$0xff]  }
  0x4f   :  { %291 = vmatpush1.bf16.msra.mxu0 %v954_v3  ;;  %v116_v15 = vpack.c.bf16 %v81_v14, %v81_v14  ;;  %v970_v18 = vld [vmem:[#allocation5 + $0x74] ss:$8 sps:$4 sm:$0xff]   ;;  %v972_v20 = vld [vmem:[#allocation5 + $0x70] ss:$8 sps:$4 sm:$0xff]   ;;  %537 = vmatprep.subr.bf16.mxu1 %v997_v16  ;;  %v1003_v22 = vld [vmem:[#allocation7 + $0x24] ss:$8 sps:$4 sm:$0xff]  }
  0x50   :  { %292 = vmatprep.subr.bf16.mxu0 %v955_v4  ;;  %v1000_v19 = vld [vmem:[#allocation7 + $0x14] ss:$8 sps:$4 sm:$0xff]   ;;  %538 = vmatpush1.bf16.msra.mxu1 %v999_v17  ;;  %v1002_v21 = vld [vmem:[#allocation7 + $0x10] ss:$8 sps:$4 sm:$0xff]   ;;  %v973_v23 = vld [vmem:[#allocation5 + $0x84] ss:$8 sps:$4 sm:$0xff]  }
  0x51   :  { %320 = vmatprep.mubr.bf16.mxu0 %v116_v15  ;;  %539 = vmatprep.subr.bf16.mxu1 %v1000_v19  ;;  %v975_v24 = vld [vmem:[#allocation5 + $0x80] ss:$8 sps:$4 sm:$0xff]   ;;  %v1006_v26 = vld [vmem:[#allocation7 + $0x34] ss:$8 sps:$4 sm:$0xff]   ;;  %v978_v28 = vld [vmem:[#allocation5 + $0x90] ss:$8 sps:$4 sm:$0xff]  }
  0x52   :  { %v1005_v25 = vld [vmem:[#allocation7 + $0x20] ss:$8 sps:$4 sm:$0xff]   ;;  %v976_v27 = vld [vmem:[#allocation5 + $0x94] ss:$8 sps:$4 sm:$0xff]   ;;  %v1008_v29 = vld [vmem:[#allocation7 + $0x30] ss:$8 sps:$4 sm:$0xff]  }
  0x53   :  { %293 = vmatpush1.bf16.msra.mxu0 %v957_v5  ;;  %v1009_v30 = vld [vmem:[#allocation7 + $0x44] ss:$8 sps:$4 sm:$0xff]   ;;  %v981_v32 = vld [vmem:[#allocation5 + $0xa0] ss:$8 sps:$4 sm:$0xff]   ;;  %v1012_v34 = vld [vmem:[#allocation7 + $0x54] ss:$8 sps:$4 sm:$0xff]  }
  0x54   :  { %294 = vmatprep.subr.bf16.mxu0 %v958_v6  ;;  %540 = vmatpush1.bf16.msra.mxu1 %v1002_v21  ;;  %v979_v31 = vld [vmem:[#allocation5 + $0xa4] ss:$8 sps:$4 sm:$0xff]   ;;  %v1011_v33 = vld [vmem:[#allocation7 + $0x40] ss:$8 sps:$4 sm:$0xff]   ;;  %v982_v35 = vld [vmem:[#allocation5 + $0xb4] ss:$8 sps:$4 sm:$0xff]  }
  0x55   :  { %541 = vmatprep.subr.bf16.mxu1 %v1003_v22  ;;  %v1014_v36 = vld [vmem:[#allocation7 + $0x50] ss:$8 sps:$4 sm:$0xff]   ;;  %v1015_v38 = vld [vmem:[#allocation7 + $0x64] ss:$8 sps:$4 sm:$0xff]   ;;  %v1017_v40 = vld [vmem:[#allocation7 + $0x60] ss:$8 sps:$4 sm:$0xff]  }
  0x56   :  { %v984_v37 = vld [vmem:[#allocation5 + $0xb0] ss:$8 sps:$4 sm:$0xff]   ;;  %v985_v39 = vld [vmem:[#allocation5 + $0xc4] ss:$8 sps:$4 sm:$0xff]   ;;  %v987_v41 = vld [vmem:[#allocation5 + $0xc0] ss:$8 sps:$4 sm:$0xff]  }
  0x57   :  { %295 = vmatpush1.bf16.msra.mxu0 %v960_v7  ;;  %v1018_v42 = vld [vmem:[#allocation7 + $0x74] ss:$8 sps:$4 sm:$0xff]   ;;  %v1020_v44 = vld [vmem:[#allocation7 + $0x70] ss:$8 sps:$4 sm:$0xff]   ;;  %v1021_v46 = vld [vmem:[#allocation7 + $0x84] ss:$8 sps:$4 sm:$0xff]  }
  0x58   :  { %296 = vmatprep.subr.bf16.mxu0 %v961_v8  ;;  %542 = vmatpush1.bf16.msra.mxu1 %v1005_v25  ;;  %v988_v43 = vld [vmem:[#allocation5 + $0xd4] ss:$8 sps:$4 sm:$0xff]   ;;  %v990_v45 = vld [vmem:[#allocation5 + $0xd0] ss:$8 sps:$4 sm:$0xff]   ;;  %v991_v47 = vld [vmem:[#allocation5 + $0xe4] ss:$8 sps:$4 sm:$0xff]  }
  0x59   :  { %543 = vmatprep.subr.bf16.mxu1 %v1006_v26  ;;  %v1023_v48 = vld [vmem:[#allocation7 + $0x80] ss:$8 sps:$4 sm:$0xff]   ;;  %v1024_v50 = vld [vmem:[#allocation7 + $0x94] ss:$8 sps:$4 sm:$0xff]   ;;  %v1026_v52 = vld [vmem:[#allocation7 + $0x90] ss:$8 sps:$4 sm:$0xff]  }
  0x5a   :  { %v993_v49 = vld [vmem:[#allocation5 + $0xe0] ss:$8 sps:$4 sm:$0xff]   ;;  %v994_v51 = vld [vmem:[#allocation5 + $0xf4] ss:$8 sps:$4 sm:$0xff]   ;;  %v996_v53 = vld [vmem:[#allocation5 + $0xf0] ss:$8 sps:$4 sm:$0xff]  }
  0x5b   :  { %297 = vmatpush1.bf16.msra.mxu0 %v963_v9  ;;  %v80_v54 = vld [vmem:[#allocation2] sm:$0xff]  ;;  %v1027_v55 = vld [vmem:[#allocation7 + $0xa4] ss:$8 sps:$4 sm:$0xff]   ;;  %v1029_v57 = vld [vmem:[#allocation7 + $0xa0] ss:$8 sps:$4 sm:$0xff]  }
  0x5c   :  { %298 = vmatprep.subr.bf16.mxu0 %v964_v10  ;;  %544 = vmatpush1.bf16.msra.mxu1 %v1008_v29  ;;  %v115_v56 = vpack.c.bf16 %v80_v54, %v80_v54  ;;  %v1030_v58 = vld [vmem:[#allocation7 + $0xb4] ss:$8 sps:$4 sm:$0xff]   ;;  %v1032_v59 = vld [vmem:[#allocation7 + $0xb0] ss:$8 sps:$4 sm:$0xff]   ;;  %v1033_v60 = vld [vmem:[#allocation7 + $0xc4] ss:$8 sps:$4 sm:$0xff]  }
  0x5d   :  { %545 = vmatprep.subr.bf16.mxu1 %v1009_v30  ;;  %v1035_v61 = vld [vmem:[#allocation7 + $0xc0] ss:$8 sps:$4 sm:$0xff]   ;;  %v1036_v62 = vld [vmem:[#allocation7 + $0xd4] ss:$8 sps:$4 sm:$0xff]   ;;  %v1038_v63 = vld [vmem:[#allocation7 + $0xd0] ss:$8 sps:$4 sm:$0xff]  }
  0x5e   :  { %v1039_v0 = vld [vmem:[#allocation7 + $0xe4] ss:$8 sps:$4 sm:$0xff]   ;;  %v1041_v1 = vld [vmem:[#allocation7 + $0xe0] ss:$8 sps:$4 sm:$0xff]   ;;  %v1042_v2 = vld [vmem:[#allocation7 + $0xf4] ss:$8 sps:$4 sm:$0xff]  }
  0x5f   :  { %299 = vmatpush1.bf16.msra.mxu0 %v966_v11  ;;  %v1044_v3 = vld [vmem:[#allocation7 + $0xf0] ss:$8 sps:$4 sm:$0xff]   ;;  %v1045_v4 = vld [vmem:[#allocation8] ss:$8 sps:$4 sm:$0xff]   ;;  %v1047_v5 = vld [vmem:[#allocation8 + $0x4] ss:$8 sps:$4 sm:$0xff]  }
  0x60   :  { %300 = vmatprep.subr.bf16.mxu0 %v967_v12  ;;  %546 = vmatpush1.bf16.msra.mxu1 %v1011_v33  ;;  %v1050_v6 = vld [vmem:[#allocation8 + $0x14] ss:$8 sps:$4 sm:$0xff]   ;;  %v1048_v7 = vld [vmem:[#allocation8 + $0x10] ss:$8 sps:$4 sm:$0xff]   ;;  %v1053_v8 = vld [vmem:[#allocation8 + $0x24] ss:$8 sps:$4 sm:$0xff]  }
  0x61   :  { %547 = vmatprep.subr.bf16.mxu1 %v1012_v34  ;;  %v1051_v9 = vld [vmem:[#allocation8 + $0x20] ss:$8 sps:$4 sm:$0xff]   ;;  %v1056_v10 = vld [vmem:[#allocation8 + $0x34] ss:$8 sps:$4 sm:$0xff]   ;;  %v1054_v11 = vld [vmem:[#allocation8 + $0x30] ss:$8 sps:$4 sm:$0xff]  }
  0x62   :  { %v1059_v12 = vld [vmem:[#allocation8 + $0x44] ss:$8 sps:$4 sm:$0xff]   ;;  %v1062_v14 = vld [vmem:[#allocation8 + $0x54] ss:$8 sps:$4 sm:$0xff]   ;;  %v1060_v15 = vld [vmem:[#allocation8 + $0x50] ss:$8 sps:$4 sm:$0xff]  }
  0x63   :  { %301 = vmatpush1.bf16.msra.mxu0 %v969_v13  ;;  %v1057_v13 = vld [vmem:[#allocation8 + $0x40] ss:$8 sps:$4 sm:$0xff]   ;;  %v1065_v16 = vld [vmem:[#allocation8 + $0x64] ss:$8 sps:$4 sm:$0xff]   ;;  %v1066_v19 = vld [vmem:[#allocation8 + $0x70] ss:$8 sps:$4 sm:$0xff]  }
  0x64   :  { %302 = vmatprep.subr.bf16.mxu0 %v970_v18  ;;  %548 = vmatpush1.bf16.msra.mxu1 %v1014_v36  ;;  %v1063_v17 = vld [vmem:[#allocation8 + $0x60] ss:$8 sps:$4 sm:$0xff]   ;;  %v1068_v18 = vld [vmem:[#allocation8 + $0x74] ss:$8 sps:$4 sm:$0xff]  }
  0x65   :  { %549 = vmatprep.subr.bf16.mxu1 %v1015_v38  ;;  %v1069_v21 = vld [vmem:[#allocation8 + $0x80] ss:$8 sps:$4 sm:$0xff]   ;;  %v1074_v22 = vld [vmem:[#allocation8 + $0x94] ss:$8 sps:$4 sm:$0xff]  }
  0x66   :  { %v1075_v25 = vld [vmem:[#allocation8 + $0xa0] ss:$8 sps:$4 sm:$0xff]   ;;  %v1080_v26 = vld [vmem:[#allocation8 + $0xb4] ss:$8 sps:$4 sm:$0xff]  }
  0x67   :  { %303 = vmatpush1.bf16.msra.mxu0 %v972_v20  ;;  %v1071_v20 = vld [vmem:[#allocation8 + $0x84] ss:$8 sps:$4 sm:$0xff]   ;;  %v1081_v29 = vld [vmem:[#allocation8 + $0xc0] ss:$8 sps:$4 sm:$0xff]   ;;  %v1086_v30 = vld [vmem:[#allocation8 + $0xd4] ss:$8 sps:$4 sm:$0xff]  }
  0x68   :  { %304 = vmatprep.subr.bf16.mxu0 %v973_v23  ;;  %550 = vmatpush1.bf16.msra.mxu1 %v1017_v40  ;;  %v1072_v23 = vld [vmem:[#allocation8 + $0x90] ss:$8 sps:$4 sm:$0xff]  }
  0x69   :  { %551 = vmatprep.subr.bf16.mxu1 %v1018_v42 }
  0x6b   :  { %305 = vmatpush1.bf16.msra.mxu0 %v975_v24  ;;  %v1077_v24 = vld [vmem:[#allocation8 + $0xa4] ss:$8 sps:$4 sm:$0xff]  }
  0x6c   :  { %306 = vmatprep.subr.bf16.mxu0 %v976_v27  ;;  %552 = vmatpush1.bf16.msra.mxu1 %v1020_v44  ;;  %v1078_v27 = vld [vmem:[#allocation8 + $0xb0] ss:$8 sps:$4 sm:$0xff]  }
  0x6d   :  { %553 = vmatprep.subr.bf16.mxu1 %v1021_v46 }
  0x6f   :  { %307 = vmatpush1.bf16.msra.mxu0 %v978_v28  ;;  %v1083_v28 = vld [vmem:[#allocation8 + $0xc4] ss:$8 sps:$4 sm:$0xff]  }
  0x70   :  { %308 = vmatprep.subr.bf16.mxu0 %v979_v31  ;;  %554 = vmatpush1.bf16.msra.mxu1 %v1023_v48  ;;  %v1084_v31 = vld [vmem:[#allocation8 + $0xd0] ss:$8 sps:$4 sm:$0xff]  }
  0x71   :  { %555 = vmatprep.subr.bf16.mxu1 %v1024_v50  ;;  %v1087_v50 = vld [vmem:[#allocation8 + $0xe0] ss:$8 sps:$4 sm:$0xff]  }
  0x73   :  { %309 = vmatpush1.bf16.msra.mxu0 %v981_v32  ;;  %v118_v32 = vlaneseq }
  0x74   :  { %310 = vmatprep.subr.bf16.mxu0 %v982_v35  ;;  %556 = vmatpush1.bf16.msra.mxu1 %v1026_v52  ;;  %v114_v35 = vld [vmem:[%s1338_s2] sm:$0x3] }
  0x75   :  { %557 = vmatprep.subr.bf16.mxu1 %v1027_v55  ;;  %v119_v33 = vshrl.u32 %v118_v32, 7  ;;  %v1090_v52 = vld [vmem:[#allocation8 + $0xf0] ss:$8 sps:$4 sm:$0xff]  }
  0x77   :  { %311 = vmatpush1.bf16.msra.mxu0 %v984_v37  ;;  %v120_v34 = vsub.s32 0, %v119_v33  ;;  %v124_v36 = vsub.s32 1, %v119_v33 }
  0x78   :  { %312 = vmatprep.subr.bf16.mxu0 %v985_v39  ;;  %558 = vmatpush1.bf16.msra.mxu1 %v1029_v57 }
  0x79   :  { %559 = vmatprep.subr.bf16.mxu1 %v1030_v58  ;;  %v121_v37 = vrot.slane %v114_v35, %v120_v34  ;;  %v125_v38 = vrot.slane %v114_v35, %v124_v36 }
  0x7b   :  { %313 = vmatpush1.bf16.msra.mxu0 %v987_v41 }
  0x7c   :  { %314 = vmatprep.subr.bf16.mxu0 %v988_v43  ;;  %560 = vmatpush1.bf16.msra.mxu1 %v1032_v59 }
  0x7d   :  { %561 = vmatprep.subr.bf16.mxu1 %v1033_v60 }
  0x7f   :  { %315 = vmatpush1.bf16.msra.mxu0 %v990_v45 }
  0x80   :  { %316 = vmatprep.subr.bf16.mxu0 %v991_v47  ;;  %562 = vmatpush1.bf16.msra.mxu1 %v1035_v61 }
  0x81   :  { %563 = vmatprep.subr.bf16.mxu1 %v1036_v62 }
  0x83   :  { %317 = vmatpush1.bf16.msra.mxu0 %v993_v49  ;;  %v1089_v49 = vld [vmem:[#allocation8 + $0xe4] ss:$8 sps:$4 sm:$0xff]  }
  0x84   :  { %318 = vmatprep.subr.bf16.mxu0 %v994_v51  ;;  %564 = vmatpush1.bf16.msra.mxu1 %v1038_v63  ;;  %v1092_v51 = vld [vmem:[#allocation8 + $0xf4] ss:$8 sps:$4 sm:$0xff]  }
  0x85   :  { %565 = vmatprep.subr.bf16.mxu1 %v1039_v0 }
  0x87   :  { %319 = vmatpush1.bf16.msra.mxu0 %v996_v53  ;;  %v363_v53 = vld [vmem:[%s1340_s4] sm:$0x3]  ;;  %s1217_s4 = smov [#allocation10]  }
  0x88   :  { %566 = vmatpush1.bf16.msra.mxu1 %v1041_v1  ;;  %786 = vmatprep.subr.bf16.mxu0 %v1047_v5  ;;  %v370_v54 = vrot.slane %v363_v53, %v120_v34  ;;  %v374_v55 = vrot.slane %v363_v53, %v124_v36  ;;  %s835_s28 = sshll.u32 %s1217_s4, 4  ;;  %s836_s28 = int_to_ptr.vmem [resolvable:$true] %s835_s28 }
  0x89   :  { %567 = vmatprep.subr.bf16.mxu1 %v1042_v2  ;;  %v612_v2 = vld [vmem:[%s1342_s6] sm:$0x3]  ;;  %s1181_s29 = scalar_lea.vmem %s836_s28, 256  ;;  %p1186_p5 = scmp.lt.s32.totalorder %s836_s28, %s836_s28 }
  0x8a   :  { %321 = vmatmul.mubr.bf16.vlgmr.msra.gmra.mrb[0].mxu0 %v115_v56  ;;  %p1182_p4 = scmp.ne.s32.totalorder %s836_s28, %s1181_s29  ;;  %p1187_p6 = scmp.lt.s32.totalorder %s1181_s29, %s1181_s29 }
  0x8b   :  { %787 = vmatpush1.bf16.msra.mxu0 %v1045_v4  ;;  %v623_v4 = vrot.slane %v612_v2, %v124_v36 }
  0x8c   :  { %568 = vmatpush1.bf16.msra.mxu1 %v1044_v3  ;;  %788 = vmatprep.subr.bf16.mxu0 %v1050_v6  ;;  %v619_v3 = vrot.slane %v612_v2, %v120_v34  ;;  %p1188_p7 = por %p1187_p6, %p1186_p5 }
  0x8e   :  { %p1189_p8 = pnand %p1188_p7, %p1182_p4 }
  0x8f   :  { %789 = vmatpush1.bf16.msra.mxu0 %v1048_v7 }
  0x90   :  { %790 = vmatprep.subr.bf16.mxu0 %v1053_v8 }
  0x93   :  { %791 = vmatpush1.bf16.msra.mxu0 %v1051_v9 }
  0x94   :  { %792 = vmatprep.subr.bf16.mxu0 %v1056_v10 }
  0x97   :  { %793 = vmatpush1.bf16.msra.mxu0 %v1054_v11 }
  0x98   :  { %794 = vmatprep.subr.bf16.mxu0 %v1059_v12 }
  0x9b   :  { %795 = vmatpush1.bf16.msra.mxu0 %v1057_v13 }
  0x9c   :  { %796 = vmatprep.subr.bf16.mxu0 %v1062_v14 }
  0x9f   :  { %797 = vmatpush1.bf16.msra.mxu0 %v1060_v15 }
  0xa0   :  { %798 = vmatprep.subr.bf16.mxu0 %v1065_v16 }
  0xa3   :  { %799 = vmatpush1.bf16.msra.mxu0 %v1063_v17 }
  0xa4   :  { %800 = vmatprep.subr.bf16.mxu0 %v1068_v18 }
  0xa7   :  { %801 = vmatpush1.bf16.msra.mxu0 %v1066_v19 }
  0xa8   :  { %802 = vmatprep.subr.bf16.mxu0 %v1071_v20 }
  0xab   :  { %803 = vmatpush1.bf16.msra.mxu0 %v1069_v21 }
  0xac   :  { %804 = vmatprep.subr.bf16.mxu0 %v1074_v22 }
  0xaf   :  { %805 = vmatpush1.bf16.msra.mxu0 %v1072_v23 }
  0xb0   :  { %806 = vmatprep.subr.bf16.mxu0 %v1077_v24 }
  0xb3   :  { %807 = vmatpush1.bf16.msra.mxu0 %v1075_v25 }
  0xb4   :  { %808 = vmatprep.subr.bf16.mxu0 %v1080_v26 }
  0xb7   :  { %809 = vmatpush1.bf16.msra.mxu0 %v1078_v27 }
  0xb8   :  { %810 = vmatprep.subr.bf16.mxu0 %v1083_v28 }
  0xbb   :  { %811 = vmatpush1.bf16.msra.mxu0 %v1081_v29 }
  0xbc   :  { %812 = vmatprep.subr.bf16.mxu0 %v1086_v30 }
  0xbf   :  { %813 = vmatpush1.bf16.msra.mxu0 %v1084_v31 }
  0xc0   :  { %814 = vmatprep.subr.bf16.mxu0 %v1089_v49 }
  0xc3   :  { %815 = vmatpush1.bf16.msra.mxu0 %v1087_v50 }
  0xc4   :  { %816 = vmatprep.subr.bf16.mxu0 %v1092_v51 }
  0xc7   :  { %817 = vmatpush1.bf16.msra.mxu0 %v1090_v52 }
 0x15d   :  { %v322_v39 = vpop.f32.mrb[0].mxu0 }
 0x15e   :  { %v323_v40 = vadd.f32 %v322_v39, %v121_v37  ;;  %v324_v41 = vpop.f32.mrb[1].mxu0 }
 0x15f   :  { %v325_v42 = vadd.f32 %v324_v41, %v125_v38  ;;  %v326_v43 = vpop.f32.mrb[2].mxu0 }
 0x160   :  { %v329_v44 = vmax.f32 %v323_v40, 0.0  ;;  %v327_v45 = vpop.f32.mrb[3].mxu0 }
 0x161   :  { %v330_v46 = vmax.f32 %v325_v42, 0.0 }
 0x162   :  { %v364_v48 = vpack.c.bf16 %v329_v44, %v329_v44 }
 0x163   :  { %v365_v47 = vpack.c.bf16 %v330_v46, %v330_v46 }
 0x165   :  { %569 = vmatprep.mubr.bf16.mxu1 %v365_v47 }
 0x166   :  { %570 = vmatmul.mubr.bf16.vlgmr.msra.gmra.mrb[0].mxu1 %v364_v48 }
 0x239   :  { %v571_v56 = vpop.f32.mrb[0].mxu1 }
 0x23a   :  { %v572_v57 = vadd.f32 %v571_v56, %v370_v54  ;;  %v573_v58 = vpop.f32.mrb[1].mxu1 }
 0x23b   :  { %v574_v59 = vadd.f32 %v573_v58, %v374_v55  ;;  %v575_v60 = vpop.f32.mrb[2].mxu1 }
 0x23c   :  { %v578_v61 = vmax.f32 %v572_v57, 0.0  ;;  %v576_v62 = vpop.f32.mrb[3].mxu1 }
 0x23d   :  { %v579_v63 = vmax.f32 %v574_v59, 0.0 }
 0x23e   :  { %v613_v1 = vpack.c.bf16 %v578_v61, %v578_v61 }
 0x23f   :  { %v614_v0 = vpack.c.bf16 %v579_v63, %v579_v63 }
 0x241   :  { %818 = vmatprep.mubr.bf16.mxu0 %v614_v0 }
 0x242   :  { %819 = vmatmul.mubr.bf16.vlgmr.msra.gmra.mrb[4].mxu0 %v613_v1 }
 0x315   :  { %v820_v5 = vpop.f32.mrb[4].mxu0 }
 0x316   :  { %v821_v6 = vadd.f32 %v820_v5, %v619_v3  ;;  %v822_v7 = vpop.f32.mrb[5].mxu0 }
 0x317   :  { %v823_v8 = vadd.f32 %v822_v7, %v623_v4  ;;  %v824_v9 = vpop.f32.mrb[6].mxu0 }
 0x318   :  { %827 = vst [vmem:[#allocation10] sm:$0xff] %v821_v6  ;;  %v825_v10 = vpop.f32.mrb[7].mxu0 }
 0x319   :  { %828 = vst [vmem:[#allocation10 + $0x8] sm:$0xff] %v823_v8 }
 0x31a   :  { %1192 = shalt.err (!%p1189_p8)
}
 0x31b   :  { %s1193_s8 = scalar_lea.hbm %s1343_s7, 256 }
 0x31c   :  { %p1194_p9 = scmp.ne.s32.totalorder %s1343_s7, %s1193_s8  ;;  %p1197_p10 = scmp.lt.u32.totalorder %s1193_s8, %s1343_s7 }
 0x31e   :  { %p1199_p11 = pnand %p1197_p10, %p1194_p9 }
 0x320   :  { %1202 = shalt.err (!%p1199_p11)
}
 0x321   :  { %838 = dma.vmem_to_hbm [thread:$0]  %s836_s28, 256, %s1343_s7, [#allocation4]  }
 0x322   :  { %1209 = dma.done.wait [#allocation4], 256  }
 0x323   :  { %1210 = vsyncadd [#allocation4], 4294967040 }
 0x324   :  { %842 = vsyncpa [#allocation3], 1 }
 0x325   :  { %843 = vsyncpa [#allocation6], 1 }
 0x326   :  { %844 = vsyncpa [#allocation9], 1 }
 0x327   :  { %845 = vsyncpa [#allocation4], 1 }

// kernel: tpu_custom_call.1
= control target key start
LH: loop header
LB: loop body
LE: loop exit
PB: predicated region body
PF: predicated region fallthrough
CT: control target
= control target key end

     0   :  { %12 = vsyncpa [#allocation3], 0  ;;  %s1336_s0 = inlined_call_operand.hbm [shape: f32[8,256], index: 0, kind: input, shape index: {}]   ;;  %s1337_s1 = inlined_call_operand.hbm [shape: bf16[256,256], index: 1, kind: input, shape index: {}]   ;;  %s1338_s2 = inlined_call_operand.vmem [shape: f32[1,256], index: 2, kind: input, shape index: {}]   ;;  %s1339_s3 = inlined_call_operand.hbm [shape: bf16[256,256], index: 3, kind: input, shape index: {}]   ;;  %s1340_s4 = inlined_call_operand.vmem [shape: f32[1,256], index: 4, kind: input, shape index: {}]   ;;  %s1341_s5 = inlined_call_operand.hbm [shape: bf16[256,256], index: 5, kind: input, shape index: {}]   ;;  %s1342_s6 = inlined_call_operand.vmem [shape: f32[1,256], index: 6, kind: input, shape index: {}]   ;;  %s1343_s7 = inlined_call_operand.hbm [shape: f32[8,256], index: 7, kind: output, shape index: {}]  }
   0x1   :  { %13 = vsyncpa [#allocation6], 0 }
   0x2   :  { %14 = vsyncpa [#allocation9], 0 }
   0x3   :  { %15 = vsyncpa [#allocation4], 0  ;;  %s1211_s24 = smov [#allocation5]   ;;  %s1093_s28 = scalar_lea.hbm %s1337_s1, 4096 }
   0x4   :  { %s31_s25 = sshll.u32 %s1211_s24, 4  ;;  %p1094_p0 = scmp.ne.s32.totalorder %s1337_s1, %s1093_s28  ;;  %s32_s25 = int_to_ptr.vmem [resolvable:$true] %s31_s25 }
   0x5   :  { %p1097_p1 = scmp.lt.u32.totalorder %s1093_s28, %s1337_s1 }
   0x7   :  { %p1099_p2 = pnand %p1097_p1, %p1094_p0 }
   0x9   :  { %1102 = shalt.err (!%p1099_p2)
}
   0xa   :  { %s1103_s10 = scalar_lea.vmem %s32_s25, 4096  ;;  %p1108_p4 = scmp.lt.s32.totalorder %s32_s25, %s32_s25 }
   0xb   :  { %p1104_p3 = scmp.ne.s32.totalorder %s32_s25, %s1103_s10  ;;  %p1109_p5 = scmp.lt.s32.totalorder %s1103_s10, %s1103_s10 }
   0xd   :  { %p1110_p6 = por %p1109_p5, %p1108_p4 }
   0xf   :  { %p1111_p7 = pnand %p1110_p6, %p1104_p3 }
  0x11   :  { %1114 = shalt.err (!%p1111_p7)
}
  0x12   :  { %s1212_s11 = smov 128   ;;  %s1213_s12 = smov 8  }
  0x13   :  { %37 = dma.hbm_to_vmem [thread:$0]  %s1337_s1, 4096, %s32_s25, [#allocation6], %s1212_s11, %s1212_s11, %s1213_s12  }
  0x14   :  { %s1214_s15 = smov [#allocation2]   ;;  %s1215_s17 = smov [#allocation7]  }
  0x15   :  { %s22_s16 = sshll.u32 %s1214_s15, 4  ;;  %s45_s18 = sshll.u32 %s1215_s17, 4  ;;  %s23_s16 = int_to_ptr.vmem [resolvable:$true] %s22_s16  ;;  %s46_s18 = int_to_ptr.vmem [resolvable:$true] %s45_s18 }
  0x16   :  { %s1115_s21 = scalar_lea.hbm %s1336_s0, 256 }
  0x17   :  { %p1116_p8 = scmp.ne.s32.totalorder %s1336_s0, %s1115_s21  ;;  %p1119_p9 = scmp.lt.u32.totalorder %s1115_s21, %s1336_s0 }
  0x19   :  { %p1121_p10 = pnand %p1119_p9, %p1116_p8 }
  0x1b   :  { %1124 = shalt.err (!%p1121_p10)
}
  0x1c   :  { %s1125_s1 = scalar_lea.vmem %s23_s16, 256  ;;  %p1130_p12 = scmp.lt.s32.totalorder %s23_s16, %s23_s16 }
  0x1d   :  { %p1126_p11 = scmp.ne.s32.totalorder %s23_s16, %s1125_s1  ;;  %p1131_p13 = scmp.lt.s32.totalorder %s1125_s1, %s1125_s1 }
  0x1f   :  { %p1132_p0 = por %p1131_p13, %p1130_p12 }
  0x21   :  { %p1133_p1 = pnand %p1132_p0, %p1126_p11 }
  0x23   :  { %1136 = shalt.err (!%p1133_p1)
}
  0x24   :  { %25 = dma.hbm_to_vmem [thread:$0]  %s1336_s0, 256, %s23_s16, [#allocation3]  }
  0x25   :  { %s1137_s30 = scalar_lea.hbm %s1339_s3, 4096 }
  0x26   :  { %p1138_p2 = scmp.ne.s32.totalorder %s1339_s3, %s1137_s30  ;;  %p1141_p3 = scmp.lt.u32.totalorder %s1137_s30, %s1339_s3 }
  0x28   :  { %p1143_p4 = pnand %p1141_p3, %p1138_p2 }
  0x2a   :  { %1146 = shalt.err (!%p1143_p4)
}
  0x2b   :  { %s1147_s14 = scalar_lea.vmem %s46_s18, 4096  ;;  %p1152_p6 = scmp.lt.s32.totalorder %s46_s18, %s46_s18 }
  0x2c   :  { %p1148_p5 = scmp.ne.s32.totalorder %s46_s18, %s1147_s14  ;;  %p1153_p7 = scmp.lt.s32.totalorder %s1147_s14, %s1147_s14 }
  0x2e   :  { %p1154_p8 = por %p1153_p7, %p1152_p6 }
  0x30   :  { %p1155_p9 = pnand %p1154_p8, %p1148_p5 }
  0x32   :  { %1158 = shalt.err (!%p1155_p9)
}
  0x33   :  { %51 = dma.hbm_to_vmem [thread:$0]  %s1339_s3, 4096, %s46_s18, [#allocation6], %s1212_s11, %s1212_s11, %s1213_s12  }
  0x34   :  { %s1216_s16 = smov [#allocation8]   ;;  %s1159_s21 = scalar_lea.hbm %s1341_s5, 4096 }
  0x35   :  { %s59_s17 = sshll.u32 %s1216_s16, 4  ;;  %p1160_p10 = scmp.ne.s32.totalorder %s1341_s5, %s1159_s21  ;;  %s60_s17 = int_to_ptr.vmem [resolvable:$true] %s59_s17 }
  0x36   :  { %p1163_p11 = scmp.lt.u32.totalorder %s1159_s21, %s1341_s5 }
  0x38   :  { %p1165_p12 = pnand %p1163_p11, %p1160_p10 }
  0x3a   :  { %1168 = shalt.err (!%p1165_p12)
}
  0x3b   :  { %s1169_s1 = scalar_lea.vmem %s60_s17, 4096  ;;  %p1174_p0 = scmp.lt.s32.totalorder %s60_s17, %s60_s17 }
  0x3c   :  { %p1170_p13 = scmp.ne.s32.totalorder %s60_s17, %s1169_s1  ;;  %p1175_p1 = scmp.lt.s32.totalorder %s1169_s1, %s1169_s1 }
  0x3e   :  { %p1176_p2 = por %p1175_p1, %p1174_p0 }
  0x40   :  { %p1177_p3 = pnand %p1176_p2, %p1170_p13 }
  0x42   :  { %1180 = shalt.err (!%p1177_p3)
}
  0x43   :  { %65 = dma.hbm_to_vmem [thread:$0]  %s1341_s5, 4096, %s60_s17, [#allocation9], %s1212_s11, %s1212_s11, %s1213_s12  }
  0x44   :  { %1203 = dma.done.wait [#allocation3], 256  }
  0x45   :  { %1204 = vsyncadd [#allocation3], 4294967040 }
  0x46   :  { %1205 = dma.done.wait [#allocation6], 8192  }
  0x47   :  { %1206 = vsyncadd [#allocation6], 4294959104 }
  0x48   :  { %1207 = dma.done.wait [#allocation9], 4096  }
  0x49   :  { %1208 = vsyncadd [#allocation9], 4294963200  ;;  %v949_v0 = vld [vmem:[#allocation5 + $0x4] ss:$8 sps:$4 sm:$0xff]   ;;  %v951_v1 = vld [vmem:[#allocation5] ss:$8 sps:$4 sm:$0xff]  }
  0x4a   :  { %288 = vmatprep.subr.bf16.mxu0 %v949_v0  ;;  %v952_v2 = vld [vmem:[#allocation5 + $0x14] ss:$8 sps:$4 sm:$0xff]   ;;  %v954_v3 = vld [vmem:[#allocation5 + $0x10] ss:$8 sps:$4 sm:$0xff]   ;;  %v955_v4 = vld [vmem:[#allocation5 + $0x24] ss:$8 sps:$4 sm:$0xff]  }
  0x4b   :  { %289 = vmatpush1.bf16.msra.mxu0 %v951_v1  ;;  %v957_v5 = vld [vmem:[#allocation5 + $0x20] ss:$8 sps:$4 sm:$0xff]   ;;  %v958_v6 = vld [vmem:[#allocation5 + $0x34] ss:$8 sps:$4 sm:$0xff]   ;;  %v960_v7 = vld [vmem:[#allocation5 + $0x30] ss:$8 sps:$4 sm:$0xff]  }
  0x4c   :  { %290 = vmatprep.subr.bf16.mxu0 %v952_v2  ;;  %v961_v8 = vld [vmem:[#allocation5 + $0x44] ss:$8 sps:$4 sm:$0xff]   ;;  %v963_v9 = vld [vmem:[#allocation5 + $0x40] ss:$8 sps:$4 sm:$0xff]   ;;  %v964_v10 = vld [vmem:[#allocation5 + $0x54] ss:$8 sps:$4 sm:$0xff]  }
  0x4d   :  { %v966_v11 = vld [vmem:[#allocation5 + $0x50] ss:$8 sps:$4 sm:$0xff]   ;;  %v967_v12 = vld [vmem:[#allocation5 + $0x64] ss:$8 sps:$4 sm:$0xff]   ;;  %v969_v13 = vld [vmem:[#allocation5 + $0x60] ss:$8 sps:$4 sm:$0xff]  }
  0x4e   :  { %v81_v14 = vld [vmem:[#allocation2 + $0x8] sm:$0xff]  ;;  %v997_v16 = vld [vmem:[#allocation7 + $0x4] ss:$8 sps:$4 sm:$0xff]   ;;  %v999_v17 = vld [vmem:[#allocation7] ss:$8 sps:$4 sm:$0xff]  }
  0x4f   :  { %291 = vmatpush1.bf16.msra.mxu0 %v954_v3  ;;  %v116_v15 = vpack.c.bf16 %v81_v14, %v81_v14  ;;  %v970_v18 = vld [vmem:[#allocation5 + $0x74] ss:$8 sps:$4 sm:$0xff]   ;;  %v972_v20 = vld [vmem:[#allocation5 + $0x70] ss:$8 sps:$4 sm:$0xff]   ;;  %537 = vmatprep.subr.bf16.mxu1 %v997_v16  ;;  %v1003_v22 = vld [vmem:[#allocation7 + $0x24] ss:$8 sps:$4 sm:$0xff]  }
  0x50   :  { %292 = vmatprep.subr.bf16.mxu0 %v955_v4  ;;  %v1000_v19 = vld [vmem:[#allocation7 + $0x14] ss:$8 sps:$4 sm:$0xff]   ;;  %538 = vmatpush1.bf16.msra.mxu1 %v999_v17  ;;  %v1002_v21 = vld [vmem:[#allocation7 + $0x10] ss:$8 sps:$4 sm:$0xff]   ;;  %v973_v23 = vld [vmem:[#allocation5 + $0x84] ss:$8 sps:$4 sm:$0xff]  }
  0x51   :  { %320 = vmatprep.mubr.bf16.mxu0 %v116_v15  ;;  %539 = vmatprep.subr.bf16.mxu1 %v1000_v19  ;;  %v975_v24 = vld [vmem:[#allocation5 + $0x80] ss:$8 sps:$4 sm:$0xff]   ;;  %v1006_v26 = vld [vmem:[#allocation7 + $0x34] ss:$8 sps:$4 sm:$0xff]   ;;  %v978_v28 = vld [vmem:[#allocation5 + $0x90] ss:$8 sps:$4 sm:$0xff]  }
  0x52   :  { %v1005_v25 = vld [vmem:[#allocation7 + $0x20] ss:$8 sps:$4 sm:$0xff]   ;;  %v976_v27 = vld [vmem:[#allocation5 + $0x94] ss:$8 sps:$4 sm:$0xff]   ;;  %v1008_v29 = vld [vmem:[#allocation7 + $0x30] ss:$8 sps:$4 sm:$0xff]  }
  0x53   :  { %293 = vmatpush1.bf16.msra.mxu0 %v957_v5  ;;  %v1009_v30 = vld [vmem:[#allocation7 + $0x44] ss:$8 sps:$4 sm:$0xff]   ;;  %v981_v32 = vld [vmem:[#allocation5 + $0xa0] ss:$8 sps:$4 sm:$0xff]   ;;  %v1012_v34 = vld [vmem:[#allocation7 + $0x54] ss:$8 sps:$4 sm:$0xff]  }
  0x54   :  { %294 = vmatprep.subr.bf16.mxu0 %v958_v6  ;;  %540 = vmatpush1.bf16.msra.mxu1 %v1002_v21  ;;  %v979_v31 = vld [vmem:[#allocation5 + $0xa4] ss:$8 sps:$4 sm:$0xff]   ;;  %v1011_v33 = vld [vmem:[#allocation7 + $0x40] ss:$8 sps:$4 sm:$0xff]   ;;  %v982_v35 = vld [vmem:[#allocation5 + $0xb4] ss:$8 sps:$4 sm:$0xff]  }
  0x55   :  { %541 = vmatprep.subr.bf16.mxu1 %v1003_v22  ;;  %v1014_v36 = vld [vmem:[#allocation7 + $0x50] ss:$8 sps:$4 sm:$0xff]   ;;  %v1015_v38 = vld [vmem:[#allocation7 + $0x64] ss:$8 sps:$4 sm:$0xff]   ;;  %v1017_v40 = vld [vmem:[#allocation7 + $0x60] ss:$8 sps:$4 sm:$0xff]  }
  0x56   :  { %v984_v37 = vld [vmem:[#allocation5 + $0xb0] ss:$8 sps:$4 sm:$0xff]   ;;  %v985_v39 = vld [vmem:[#allocation5 + $0xc4] ss:$8 sps:$4 sm:$0xff]   ;;  %v987_v41 = vld [vmem:[#allocation5 + $0xc0] ss:$8 sps:$4 sm:$0xff]  }
  0x57   :  { %295 = vmatpush1.bf16.msra.mxu0 %v960_v7  ;;  %v1018_v42 = vld [vmem:[#allocation7 + $0x74] ss:$8 sps:$4 sm:$0xff]   ;;  %v1020_v44 = vld [vmem:[#allocation7 + $0x70] ss:$8 sps:$4 sm:$0xff]   ;;  %v1021_v46 = vld [vmem:[#allocation7 + $0x84] ss:$8 sps:$4 sm:$0xff]  }
  0x58   :  { %296 = vmatprep.subr.bf16.mxu0 %v961_v8  ;;  %542 = vmatpush1.bf16.msra.mxu1 %v1005_v25  ;;  %v988_v43 = vld [vmem:[#allocation5 + $0xd4] ss:$8 sps:$4 sm:$0xff]   ;;  %v990_v45 = vld [vmem:[#allocation5 + $0xd0] ss:$8 sps:$4 sm:$0xff]   ;;  %v991_v47 = vld [vmem:[#allocation5 + $0xe4] ss:$8 sps:$4 sm:$0xff]  }
  0x59   :  { %543 = vmatprep.subr.bf16.mxu1 %v1006_v26  ;;  %v1023_v48 = vld [vmem:[#allocation7 + $0x80] ss:$8 sps:$4 sm:$0xff]   ;;  %v1024_v50 = vld [vmem:[#allocation7 + $0x94] ss:$8 sps:$4 sm:$0xff]   ;;  %v1026_v52 = vld [vmem:[#allocation7 + $0x90] ss:$8 sps:$4 sm:$0xff]  }
  0x5a   :  { %v993_v49 = vld [vmem:[#allocation5 + $0xe0] ss:$8 sps:$4 sm:$0xff]   ;;  %v994_v51 = vld [vmem:[#allocation5 + $0xf4] ss:$8 sps:$4 sm:$0xff]   ;;  %v996_v53 = vld [vmem:[#allocation5 + $0xf0] ss:$8 sps:$4 sm:$0xff]  }
  0x5b   :  { %297 = vmatpush1.bf16.msra.mxu0 %v963_v9  ;;  %v80_v54 = vld [vmem:[#allocation2] sm:$0xff]  ;;  %v1027_v55 = vld [vmem:[#allocation7 + $0xa4] ss:$8 sps:$4 sm:$0xff]   ;;  %v1029_v57 = vld [vmem:[#allocation7 + $0xa0] ss:$8 sps:$4 sm:$0xff]  }
  0x5c   :  { %298 = vmatprep.subr.bf16.mxu0 %v964_v10  ;;  %544 = vmatpush1.bf16.msra.mxu1 %v1008_v29  ;;  %v115_v56 = vpack.c.bf16 %v80_v54, %v80_v54  ;;  %v1030_v58 = vld [vmem:[#allocation7 + $0xb4] ss:$8 sps:$4 sm:$0xff]   ;;  %v1032_v59 = vld [vmem:[#allocation7 + $0xb0] ss:$8 sps:$4 sm:$0xff]   ;;  %v1033_v60 = vld [vmem:[#allocation7 + $0xc4] ss:$8 sps:$4 sm:$0xff]  }
  0x5d   :  { %545 = vmatprep.subr.bf16.mxu1 %v1009_v30  ;;  %v1035_v61 = vld [vmem:[#allocation7 + $0xc0] ss:$8 sps:$4 sm:$0xff]   ;;  %v1036_v62 = vld [vmem:[#allocation7 + $0xd4] ss:$8 sps:$4 sm:$0xff]   ;;  %v1038_v63 = vld [vmem:[#allocation7 + $0xd0] ss:$8 sps:$4 sm:$0xff]  }
  0x5e   :  { %v1039_v0 = vld [vmem:[#allocation7 + $0xe4] ss:$8 sps:$4 sm:$0xff]   ;;  %v1041_v1 = vld [vmem:[#allocation7 + $0xe0] ss:$8 sps:$4 sm:$0xff]   ;;  %v1042_v2 = vld [vmem:[#allocation7 + $0xf4] ss:$8 sps:$4 sm:$0xff]  }
  0x5f   :  { %299 = vmatpush1.bf16.msra.mxu0 %v966_v11  ;;  %v1044_v3 = vld [vmem:[#allocation7 + $0xf0] ss:$8 sps:$4 sm:$0xff]   ;;  %v1045_v4 = vld [vmem:[#allocation8] ss:$8 sps:$4 sm:$0xff]   ;;  %v1047_v5 = vld [vmem:[#allocation8 + $0x4] ss:$8 sps:$4 sm:$0xff]  }
  0x60   :  { %300 = vmatprep.subr.bf16.mxu0 %v967_v12  ;;  %546 = vmatpush1.bf16.msra.mxu1 %v1011_v33  ;;  %v1050_v6 = vld [vmem:[#allocation8 + $0x14] ss:$8 sps:$4 sm:$0xff]   ;;  %v1048_v7 = vld [vmem:[#allocation8 + $0x10] ss:$8 sps:$4 sm:$0xff]   ;;  %v1053_v8 = vld [vmem:[#allocation8 + $0x24] ss:$8 sps:$4 sm:$0xff]  }
  0x61   :  { %547 = vmatprep.subr.bf16.mxu1 %v1012_v34  ;;  %v1051_v9 = vld [vmem:[#allocation8 + $0x20] ss:$8 sps:$4 sm:$0xff]   ;;  %v1056_v10 = vld [vmem:[#allocation8 + $0x34] ss:$8 sps:$4 sm:$0xff]   ;;  %v1054_v11 = vld [vmem:[#allocation8 + $0x30] ss:$8 sps:$4 sm:$0xff]  }
  0x62   :  { %v1059_v12 = vld [vmem:[#allocation8 + $0x44] ss:$8 sps:$4 sm:$0xff]   ;;  %v1062_v14 = vld [vmem:[#allocation8 + $0x54] ss:$8 sps:$4 sm:$0xff]   ;;  %v1060_v15 = vld [vmem:[#allocation8 + $0x50] ss:$8 sps:$4 sm:$0xff]  }
  0x63   :  { %301 = vmatpush1.bf16.msra.mxu0 %v969_v13  ;;  %v1057_v13 = vld [vmem:[#allocation8 + $0x40] ss:$8 sps:$4 sm:$0xff]   ;;  %v1065_v16 = vld [vmem:[#allocation8 + $0x64] ss:$8 sps:$4 sm:$0xff]   ;;  %v1066_v19 = vld [vmem:[#allocation8 + $0x70] ss:$8 sps:$4 sm:$0xff]  }
  0x64   :  { %302 = vmatprep.subr.bf16.mxu0 %v970_v18  ;;  %548 = vmatpush1.bf16.msra.mxu1 %v1014_v36  ;;  %v1063_v17 = vld [vmem:[#allocation8 + $0x60] ss:$8 sps:$4 sm:$0xff]   ;;  %v1068_v18 = vld [vmem:[#allocation8 + $0x74] ss:$8 sps:$4 sm:$0xff]  }
  0x65   :  { %549 = vmatprep.subr.bf16.mxu1 %v1015_v38  ;;  %v1069_v21 = vld [vmem:[#allocation8 + $0x80] ss:$8 sps:$4 sm:$0xff]   ;;  %v1074_v22 = vld [vmem:[#allocation8 + $0x94] ss:$8 sps:$4 sm:$0xff]  }
  0x66   :  { %v1075_v25 = vld [vmem:[#allocation8 + $0xa0] ss:$8 sps:$4 sm:$0xff]   ;;  %v1080_v26 = vld [vmem:[#allocation8 + $0xb4] ss:$8 sps:$4 sm:$0xff]  }
  0x67   :  { %303 = vmatpush1.bf16.msra.mxu0 %v972_v20  ;;  %v1071_v20 = vld [vmem:[#allocation8 + $0x84] ss:$8 sps:$4 sm:$0xff]   ;;  %v1081_v29 = vld [vmem:[#allocation8 + $0xc0] ss:$8 sps:$4 sm:$0xff]   ;;  %v1086_v30 = vld [vmem:[#allocation8 + $0xd4] ss:$8 sps:$4 sm:$0xff]  }
  0x68   :  { %304 = vmatprep.subr.bf16.mxu0 %v973_v23  ;;  %550 = vmatpush1.bf16.msra.mxu1 %v1017_v40  ;;  %v1072_v23 = vld [vmem:[#allocation8 + $0x90] ss:$8 sps:$4 sm:$0xff]  }
  0x69   :  { %551 = vmatprep.subr.bf16.mxu1 %v1018_v42 }
  0x6b   :  { %305 = vmatpush1.bf16.msra.mxu0 %v975_v24  ;;  %v1077_v24 = vld [vmem:[#allocation8 + $0xa4] ss:$8 sps:$4 sm:$0xff]  }
  0x6c   :  { %306 = vmatprep.subr.bf16.mxu0 %v976_v27  ;;  %552 = vmatpush1.bf16.msra.mxu1 %v1020_v44  ;;  %v1078_v27 = vld [vmem:[#allocation8 + $0xb0] ss:$8 sps:$4 sm:$0xff]  }
  0x6d   :  { %553 = vmatprep.subr.bf16.mxu1 %v1021_v46 }
  0x6f   :  { %307 = vmatpush1.bf16.msra.mxu0 %v978_v28  ;;  %v1083_v28 = vld [vmem:[#allocation8 + $0xc4] ss:$8 sps:$4 sm:$0xff]  }
  0x70   :  { %308 = vmatprep.subr.bf16.mxu0 %v979_v31  ;;  %554 = vmatpush1.bf16.msra.mxu1 %v1023_v48  ;;  %v1084_v31 = vld [vmem:[#allocation8 + $0xd0] ss:$8 sps:$4 sm:$0xff]  }
  0x71   :  { %555 = vmatprep.subr.bf16.mxu1 %v1024_v50  ;;  %v1087_v50 = vld [vmem:[#allocation8 + $0xe0] ss:$8 sps:$4 sm:$0xff]  }
  0x73   :  { %309 = vmatpush1.bf16.msra.mxu0 %v981_v32  ;;  %v118_v32 = vlaneseq }
  0x74   :  { %310 = vmatprep.subr.bf16.mxu0 %v982_v35  ;;  %556 = vmatpush1.bf16.msra.mxu1 %v1026_v52  ;;  %v114_v35 = vld [vmem:[%s1338_s2] sm:$0x3] }
  0x75   :  { %557 = vmatprep.subr.bf16.mxu1 %v1027_v55  ;;  %v119_v33 = vshrl.u32 %v118_v32, 7  ;;  %v1090_v52 = vld [vmem:[#allocation8 + $0xf0] ss:$8 sps:$4 sm:$0xff]  }
  0x77   :  { %311 = vmatpush1.bf16.msra.mxu0 %v984_v37  ;;  %v120_v34 = vsub.s32 0, %v119_v33  ;;  %v124_v36 = vsub.s32 1, %v119_v33 }
  0x78   :  { %312 = vmatprep.subr.bf16.mxu0 %v985_v39  ;;  %558 = vmatpush1.bf16.msra.mxu1 %v1029_v57 }
  0x79   :  { %559 = vmatprep.subr.bf16.mxu1 %v1030_v58  ;;  %v121_v37 = vrot.slane %v114_v35, %v120_v34  ;;  %v125_v38 = vrot.slane %v114_v35, %v124_v36 }
  0x7b   :  { %313 = vmatpush1.bf16.msra.mxu0 %v987_v41 }
  0x7c   :  { %314 = vmatprep.subr.bf16.mxu0 %v988_v43  ;;  %560 = vmatpush1.bf16.msra.mxu1 %v1032_v59 }
  0x7d   :  { %561 = vmatprep.subr.bf16.mxu1 %v1033_v60 }
  0x7f   :  { %315 = vmatpush1.bf16.msra.mxu0 %v990_v45 }
  0x80   :  { %316 = vmatprep.subr.bf16.mxu0 %v991_v47  ;;  %562 = vmatpush1.bf16.msra.mxu1 %v1035_v61 }
  0x81   :  { %563 = vmatprep.subr.bf16.mxu1 %v1036_v62 }
  0x83   :  { %317 = vmatpush1.bf16.msra.mxu0 %v993_v49  ;;  %v1089_v49 = vld [vmem:[#allocation8 + $0xe4] ss:$8 sps:$4 sm:$0xff]  }
  0x84   :  { %318 = vmatprep.subr.bf16.mxu0 %v994_v51  ;;  %564 = vmatpush1.bf16.msra.mxu1 %v1038_v63  ;;  %v1092_v51 = vld [vmem:[#allocation8 + $0xf4] ss:$8 sps:$4 sm:$0xff]  }
  0x85   :  { %565 = vmatprep.subr.bf16.mxu1 %v1039_v0 }
  0x87   :  { %319 = vmatpush1.bf16.msra.mxu0 %v996_v53  ;;  %v363_v53 = vld [vmem:[%s1340_s4] sm:$0x3]  ;;  %s1217_s4 = smov [#allocation10]  }
  0x88   :  { %566 = vmatpush1.bf16.msra.mxu1 %v1041_v1  ;;  %786 = vmatprep.subr.bf16.mxu0 %v1047_v5  ;;  %v370_v54 = vrot.slane %v363_v53, %v120_v34  ;;  %v374_v55 = vrot.slane %v363_v53, %v124_v36  ;;  %s835_s28 = sshll.u32 %s1217_s4, 4  ;;  %s836_s28 = int_to_ptr.vmem [resolvable:$true] %s835_s28 }
  0x89   :  { %567 = vmatprep.subr.bf16.mxu1 %v1042_v2  ;;  %v612_v2 = vld [vmem:[%s1342_s6] sm:$0x3]  ;;  %s1181_s29 = scalar_lea.vmem %s836_s28, 256  ;;  %p1186_p5 = scmp.lt.s32.totalorder %s836_s28, %s836_s28 }
  0x8a   :  { %321 = vmatmul.mubr.bf16.vlgmr.msra.gmra.mrb[0].mxu0 %v115_v56  ;;  %p1182_p4 = scmp.ne.s32.totalorder %s836_s28, %s1181_s29  ;;  %p1187_p6 = scmp.lt.s32.totalorder %s1181_s29, %s1181_s29 }
  0x8b   :  { %787 = vmatpush1.bf16.msra.mxu0 %v1045_v4  ;;  %v623_v4 = vrot.slane %v612_v2, %v124_v36 }
  0x8c   :  { %568 = vmatpush1.bf16.msra.mxu1 %v1044_v3  ;;  %788 = vmatprep.subr.bf16.mxu0 %v1050_v6  ;;  %v619_v3 = vrot.slane %v612_v2, %v120_v34  ;;  %p1188_p7 = por %p1187_p6, %p1186_p5 }
  0x8e   :  { %p1189_p8 = pnand %p1188_p7, %p1182_p4 }
  0x8f   :  { %789 = vmatpush1.bf16.msra.mxu0 %v1048_v7 }
  0x90   :  { %790 = vmatprep.subr.bf16.mxu0 %v1053_v8 }
  0x93   :  { %791 = vmatpush1.bf16.msra.mxu0 %v1051_v9 }
  0x94   :  { %792 = vmatprep.subr.bf16.mxu0 %v1056_v10 }
  0x97   :  { %793 = vmatpush1.bf16.msra.mxu0 %v1054_v11 }
  0x98   :  { %794 = vmatprep.subr.bf16.mxu0 %v1059_v12 }
  0x9b   :  { %795 = vmatpush1.bf16.msra.mxu0 %v1057_v13 }
  0x9c   :  { %796 = vmatprep.subr.bf16.mxu0 %v1062_v14 }
  0x9f   :  { %797 = vmatpush1.bf16.msra.mxu0 %v1060_v15 }
  0xa0   :  { %798 = vmatprep.subr.bf16.mxu0 %v1065_v16 }
  0xa3   :  { %799 = vmatpush1.bf16.msra.mxu0 %v1063_v17 }
  0xa4   :  { %800 = vmatprep.subr.bf16.mxu0 %v1068_v18 }
  0xa7   :  { %801 = vmatpush1.bf16.msra.mxu0 %v1066_v19 }
  0xa8   :  { %802 = vmatprep.subr.bf16.mxu0 %v1071_v20 }
  0xab   :  { %803 = vmatpush1.bf16.msra.mxu0 %v1069_v21 }
  0xac   :  { %804 = vmatprep.subr.bf16.mxu0 %v1074_v22 }
  0xaf   :  { %805 = vmatpush1.bf16.msra.mxu0 %v1072_v23 }
  0xb0   :  { %806 = vmatprep.subr.bf16.mxu0 %v1077_v24 }
  0xb3   :  { %807 = vmatpush1.bf16.msra.mxu0 %v1075_v25 }
  0xb4   :  { %808 = vmatprep.subr.bf16.mxu0 %v1080_v26 }
  0xb7   :  { %809 = vmatpush1.bf16.msra.mxu0 %v1078_v27 }
  0xb8   :  { %810 = vmatprep.subr.bf16.mxu0 %v1083_v28 }
  0xbb   :  { %811 = vmatpush1.bf16.msra.mxu0 %v1081_v29 }
  0xbc   :  { %812 = vmatprep.subr.bf16.mxu0 %v1086_v30 }
  0xbf   :  { %813 = vmatpush1.bf16.msra.mxu0 %v1084_v31 }
  0xc0   :  { %814 = vmatprep.subr.bf16.mxu0 %v1089_v49 }
  0xc3   :  { %815 = vmatpush1.bf16.msra.mxu0 %v1087_v50 }
  0xc4   :  { %816 = vmatprep.subr.bf16.mxu0 %v1092_v51 }
  0xc7   :  { %817 = vmatpush1.bf16.msra.mxu0 %v1090_v52 }
 0x15d   :  { %v322_v39 = vpop.f32.mrb[0].mxu0 }
 0x15e   :  { %v323_v40 = vadd.f32 %v322_v39, %v121_v37  ;;  %v324_v41 = vpop.f32.mrb[1].mxu0 }
 0x15f   :  { %v325_v42 = vadd.f32 %v324_v41, %v125_v38  ;;  %v326_v43 = vpop.f32.mrb[2].mxu0 }
 0x160   :  { %v329_v44 = vmax.f32 %v323_v40, 0.0  ;;  %v327_v45 = vpop.f32.mrb[3].mxu0 }
 0x161   :  { %v330_v46 = vmax.f32 %v325_v42, 0.0 }
 0x162   :  { %v364_v48 = vpack.c.bf16 %v329_v44, %v329_v44 }
 0x163   :  { %v365_v47 = vpack.c.bf16 %v330_v46, %v330_v46 }
 0x165   :  { %569 = vmatprep.mubr.bf16.mxu1 %v365_v47 }
 0x166   :  { %570 = vmatmul.mubr.bf16.vlgmr.msra.gmra.mrb[0].mxu1 %v364_v48 }
 0x239   :  { %v571_v56 = vpop.f32.mrb[0].mxu1 }
 0x23a   :  { %v572_v57 = vadd.f32 %v571_v56, %v370_v54  ;;  %v573_v58 = vpop.f32.mrb[1].mxu1 }
 0x23b   :  { %v574_v59 = vadd.f32 %v573_v58, %v374_v55  ;;  %v575_v60 = vpop.f32.mrb[2].mxu1 }
 0x23c   :  { %v578_v61 = vmax.f32 %v572_v57, 0.0  ;;  %v576_v62 = vpop.f32.mrb[3].mxu1 }
 0x23d   :  { %v579_v63 = vmax.f32 %v574_v59, 0.0 }
 0x23e   :  { %v613_v1 = vpack.c.bf16 %v578_v61, %v578_v61 }
 0x23f   :  { %v614_v0 = vpack.c.bf16 %v579_v63, %v579_v63 }
 0x241   :  { %818 = vmatprep.mubr.bf16.mxu0 %v614_v0 }
 0x242   :  { %819 = vmatmul.mubr.bf16.vlgmr.msra.gmra.mrb[4].mxu0 %v613_v1 }
 0x315   :  { %v820_v5 = vpop.f32.mrb[4].mxu0 }
 0x316   :  { %v821_v6 = vadd.f32 %v820_v5, %v619_v3  ;;  %v822_v7 = vpop.f32.mrb[5].mxu0 }
 0x317   :  { %v823_v8 = vadd.f32 %v822_v7, %v623_v4  ;;  %v824_v9 = vpop.f32.mrb[6].mxu0 }
 0x318   :  { %827 = vst [vmem:[#allocation10] sm:$0xff] %v821_v6  ;;  %v825_v10 = vpop.f32.mrb[7].mxu0 }
 0x319   :  { %828 = vst [vmem:[#allocation10 + $0x8] sm:$0xff] %v823_v8 }
 0x31a   :  { %1192 = shalt.err (!%p1189_p8)
}
 0x31b   :  { %s1193_s8 = scalar_lea.hbm %s1343_s7, 256 }
 0x31c   :  { %p1194_p9 = scmp.ne.s32.totalorder %s1343_s7, %s1193_s8  ;;  %p1197_p10 = scmp.lt.u32.totalorder %s1193_s8, %s1343_s7 }
 0x31e   :  { %p1199_p11 = pnand %p1197_p10, %p1194_p9 }
 0x320   :  { %1202 = shalt.err (!%p1199_p11)
}
 0x321   :  { %838 = dma.vmem_to_hbm [thread:$0]  %s836_s28, 256, %s1343_s7, [#allocation4]  }
 0x322   :  { %1209 = dma.done.wait [#allocation4], 256  }
 0x323   :  { %1210 = vsyncadd [#allocation4], 4294967040 }
 0x324   :  { %842 = vsyncpa [#allocation3], 1 }
 0x325   :  { %843 = vsyncpa [#allocation6], 1 }
 0x326   :  { %844 = vsyncpa [#allocation9], 1 }
 0x327   :  { %845 = vsyncpa [#allocation4], 1 }

</bundles_post_ra>
